<compile_context>
chip_gen: v7x
topology: tpu7x:2x2x1
jax: 0.10.0
libtpu: 0.0.40
codegen_flags: <defaults>
</compile_context>

<pallas_src>
import jax
import jax.numpy as jnp
from jax.experimental import pallas as pl
from jax.experimental.pallas import tpu as pltpu

_SMALL_BYTES = 512 << 10   # <= 512 KiB: single whole-array VMEM block, grid=()


def _target_block_bytes() -> int:
    """Per-block bytes for the streaming path, picked per TPU generation."""
    try:
        kind = jax.devices()[0].device_kind.lower()
    except Exception:  # pragma: no cover - defensive; fall back to safe size
        kind = ""
    if "v6" in kind or "v7" in kind:
        # 4 MiB blocks -> 2 in + 2 out buffers = 16 MiB, inside the 32 MiB
        # scoped-VMEM default; at v7x's ~3.2 TB/s this keeps the ~0.35 us
        # per-grid-step overhead under ~10% of each step.
        return 4 << 20
    # v5e (16 MiB scoped-VMEM default, ~0.8 TB/s HBM) and unknown chips.
    return 2 << 20


def _normalize_kernel(x_ref, o_ref):
    # (x - 0.5) / 0.5 == (x - 0.5) * 2.0 (bit-exact: /0.5 is an exact *2).
    # Int inputs are cast here so the wrapper never adds an HBM pass for it.
    x = x_ref[...].astype(o_ref.dtype)
    o_ref[...] = (x - 0.5) * 2.0


def _normalize_single_block(x: jax.Array, out_dtype) -> jax.Array:
    # Whole array resident in VMEM, no grid, no tiling constraints.
    return pl.pallas_call(
        _normalize_kernel,
        out_shape=jax.ShapeDtypeStruct(x.shape, out_dtype),
        in_specs=[pl.BlockSpec(memory_space=pltpu.MemorySpace.VMEM)],
        out_specs=pl.BlockSpec(memory_space=pltpu.MemorySpace.VMEM),
    )(x)


def _normalize_tiled(x2d: jax.Array, out_dtype, target_block_bytes: int) -> jax.Array:
    rows, lanes = x2d.shape
    itemsize = max(jnp.dtype(x2d.dtype).itemsize, jnp.dtype(out_dtype).itemsize)
    row_bytes = lanes * itemsize
    # Biggest ~target-sized block, multiple of 32 sublanes (covers f32/bf16/i8).
    tile_rows = max(32, (target_block_bytes // row_bytes) // 32 * 32)
    # Keep at least 2 grid steps whenever the array allows it so input and
    # output DMA streams overlap and both v7x TensorCores get work.
    half_rows = (((rows + 1) // 2) + 31) // 32 * 32
    tile_rows = min(tile_rows, max(32, half_rows))
    grid = (pl.cdiv(rows, tile_rows),)
    return pl.pallas_call(
        _normalize_kernel,
        out_shape=jax.ShapeDtypeStruct((rows, lanes), out_dtype),
        grid_spec=pltpu.PrefetchScalarGridSpec(
            num_scalar_prefetch=0,
            grid=grid,
            in_specs=[pl.BlockSpec((tile_rows, lanes), lambda i: (i, 0))],
            out_specs=pl.BlockSpec((tile_rows, lanes), lambda i: (i, 0)),
        ),
        compiler_params=pltpu.CompilerParams(
            dimension_semantics=("parallel",),
        ),
    )(x2d)


def normalize_layer(x: jax.Array) -> jax.Array:
    """Pallas implementation of NormalizeLayer.forward: (x - 0.5) / 0.5."""
    # PyTorch promotes int inputs to the default float dtype (float32); the
    # cast itself happens inside the kernel, not here.
    out_dtype = x.dtype if jnp.issubdtype(x.dtype, jnp.floating) else jnp.float32

    n = x.size
    if n == 0:
        return jnp.zeros(x.shape, out_dtype)

    nbytes = n * max(jnp.dtype(x.dtype).itemsize, jnp.dtype(out_dtype).itemsize)

    # Widest lane-dense 2D view the element count supports (reshape of a
    # contiguous array is metadata-only — no HBM pass).
    lanes = 0
    for cand in (4096, 2048, 1024, 512, 256, 128):
        if n % cand == 0:
            lanes = cand
            break

    if lanes == 0:
        if nbytes <= _SMALL_BYTES:
            # Tiny, oddly-sized: hand the original array straight to the kernel.
            return _normalize_single_block(x, out_dtype)
        # Rare: large tensor whose element count is not a multiple of 128.  A
        # Pallas path here would need pad + slice (two extra full HBM passes);
        # a bare XLA elementwise op already runs at the HBM roofline.
        return (x.astype(out_dtype) - 0.5) * 2.0

    rows = n // lanes
    x2d = x.reshape(rows, lanes)
    if nbytes <= _SMALL_BYTES:
        out2d = _normalize_single_block(x2d, out_dtype)
    else:
        out2d = _normalize_tiled(x2d, out_dtype, _target_block_bytes())
    return out2d.reshape(x.shape)


if __name__ == "__main__":
    key = jax.random.PRNGKey(0)
    k0, k1, k2 = jax.random.split(key, 3)

    # NCHW input like the module expects: batch=2, channels=4, spatial=16x16.
    x = jax.random.uniform(k0, (2, 4, 16, 16), dtype=jnp.float32)
    y = normalize_layer(x)
    jax.block_until_ready(y)
    y_ref = (x - 0.5) / 0.5
    assert y.shape == x.shape and y.dtype == x.dtype
    assert jnp.allclose(y, y_ref, atol=1e-6), "mismatch vs reference (small path)"

    # Integer input: int -> float32 promotion fused into the kernel.
    xi = jax.random.randint(k1, (2, 4, 16, 16), 0, 256, dtype=jnp.int32)
    yi = normalize_layer(xi)
    jax.block_until_ready(yi)
    yi_ref = (xi.astype(jnp.float32) - 0.5) / 0.5
    assert yi.shape == xi.shape and yi.dtype == jnp.float32
    assert jnp.allclose(yi, yi_ref, atol=1e-6), "mismatch vs reference (int path)"

    # Streaming (tiled, lane-dense, >=2 grid steps, native-bf16) path.
    xl = jax.random.uniform(k2, (8, 64, 64, 64), dtype=jnp.float32).astype(jnp.bfloat16)
    yl = normalize_layer(xl)
    jax.block_until_ready(yl)
    yl_ref = (xl - 0.5) / 0.5
    assert yl.shape == xl.shape and yl.dtype == xl.dtype
    assert jnp.allclose(
        yl.astype(jnp.float32), yl_ref.astype(jnp.float32), atol=1e-2
    ), "mismatch vs reference (tiled path)"

    print("KERNEL_OK")
</pallas_src>

<mosaic_0001>
module attributes {stable_mosaic.version = 11 : i64} {
  func.func @_normalize_kernel(%arg0: memref<1x2048xf32, #tpu.memory_space<vmem>>, %arg1: memref<1x2048xf32, #tpu.memory_space<vmem>>) attributes {dimension_semantics = [], scalar_prefetch = 0 : i64, scratch_operands = 0 : i64, tpu.core_type = #tpu.core_type<tc>} {
    %c0 = arith.constant 0 : index
    %c0_0 = arith.constant 0 : index
    %0 = vector.load %arg0[%c0, %c0_0] : memref<1x2048xf32, #tpu.memory_space<vmem>>, vector<1x2048xf32>
    %cst = arith.constant 5.000000e-01 : f32
    %1 = vector.broadcast %cst : f32 to vector<1x2048xf32>
    %2 = arith.subf %0, %1 : vector<1x2048xf32>
    %cst_1 = arith.constant 2.000000e+00 : f32
    %3 = vector.broadcast %cst_1 : f32 to vector<1x2048xf32>
    %4 = arith.mulf %2, %3 : vector<1x2048xf32>
    %c0_2 = arith.constant 0 : index
    %c0_3 = arith.constant 0 : index
    %5 = vector.load %arg1[%c0_2, %c0_3] : memref<1x2048xf32, #tpu.memory_space<vmem>>, vector<1x2048xf32>
    tpu.vector_store %arg1[%c0_2, %c0_3], %4 {strides = array<i32>} : memref<1x2048xf32, #tpu.memory_space<vmem>>, vector<1x2048xf32>,
    return
  }
}

</mosaic_0001>

<bundles_post_ra>
// kernel: tpu_custom_call.1
= control target key start
LH: loop header
LB: loop body
LE: loop exit
PB: predicated region body
PF: predicated region fallthrough
CT: control target
= control target key end

     0   :  { %6 = vsyncpa [#allocation3], 0  ;;  %s132_s0 = inlined_call_operand.hbm [shape: f32[1,2048], index: 0, kind: input, shape index: {}]   ;;  %s133_s1 = inlined_call_operand.hbm [shape: f32[1,2048], index: 1, kind: output, shape index: {}]  }
   0x1   :  { %7 = vsyncpa [#allocation4], 0  ;;  %s96_s6 = smov [#allocation2]   ;;  %s48_s10 = scalar_lea.hbm %s132_s0, 256 }
   0x2   :  { %s14_s7 = sshll.u32 %s96_s6, 4  ;;  %p49_p0 = scmp.ne.s32.totalorder %s132_s0, %s48_s10  ;;  %s15_s7 = int_to_ptr.vmem [resolvable:$true] %s14_s7 }
   0x3   :  { %p52_p1 = scmp.lt.u32.totalorder %s48_s10, %s132_s0 }
   0x5   :  { %p54_p2 = pnand %p52_p1, %p49_p0 }
   0x7   :  { %57 = shalt.err (!%p54_p2)
}
   0x8   :  { %s58_s15 = scalar_lea.vmem %s15_s7, 256  ;;  %p63_p4 = scmp.lt.s32.totalorder %s15_s7, %s15_s7 }
   0x9   :  { %p59_p3 = scmp.ne.s32.totalorder %s15_s7, %s58_s15  ;;  %p64_p5 = scmp.lt.s32.totalorder %s58_s15, %s58_s15 }
   0xb   :  { %p65_p6 = por %p64_p5, %p63_p4 }
   0xd   :  { %p66_p7 = pnand %p65_p6, %p59_p3 }
   0xf   :  { %69 = shalt.err (!%p66_p7)
}
  0x10   :  { %17 = dma.hbm_to_vmem [thread:$0]  %s132_s0, 256, %s15_s7, [#allocation3]  }
  0x11   :  { %92 = dma.done.wait [#allocation3], 256  }
  0x12   :  { %93 = vsyncadd [#allocation3], 4294967040  ;;  %v21_v0 = vld [vmem:[#allocation2] sm:$0xff]  ;;  %v22_v1 = vld [vmem:[#allocation2 + $0x8] sm:$0xff]  ;;  %s97_s18 = smov [#allocation5]  }
  0x13   :  { %s35_s19 = sshll.u32 %s97_s18, 4  ;;  %v44_v2 = vadd.f32 -0.5, %v21_v0  ;;  %v45_v3 = vadd.f32 -0.5, %v22_v1  ;;  %s36_s19 = int_to_ptr.vmem [resolvable:$true] %s35_s19 }
  0x14   :  { %s70_s20 = scalar_lea.vmem %s36_s19, 256  ;;  %p75_p9 = scmp.lt.s32.totalorder %s36_s19, %s36_s19 }
  0x15   :  { %v25_v4 = vmul.f32 2.0, %v44_v2  ;;  %v26_v5 = vmul.f32 2.0, %v45_v3  ;;  %p71_p8 = scmp.ne.s32.totalorder %s36_s19, %s70_s20  ;;  %p76_p10 = scmp.lt.s32.totalorder %s70_s20, %s70_s20 }
  0x17   :  { %27 = vst [vmem:[#allocation5] sm:$0xff] %v25_v4  ;;  %28 = vst [vmem:[#allocation5 + $0x8] sm:$0xff] %v26_v5  ;;  %p77_p11 = por %p76_p10, %p75_p9 }
  0x19   :  { %p78_p12 = pnand %p77_p11, %p71_p8 }
  0x1b   :  { %81 = shalt.err (!%p78_p12)
}
  0x1c   :  { %s82_s22 = scalar_lea.hbm %s133_s1, 256 }
  0x1d   :  { %p83_p13 = scmp.ne.s32.totalorder %s133_s1, %s82_s22  ;;  %p86_p0 = scmp.lt.u32.totalorder %s82_s22, %s133_s1 }
  0x1f   :  { %p88_p1 = pnand %p86_p0, %p83_p13 }
  0x21   :  { %91 = shalt.err (!%p88_p1)
}
  0x22   :  { %38 = dma.vmem_to_hbm [thread:$0]  %s36_s19, 256, %s133_s1, [#allocation4]  }
  0x23   :  { %94 = dma.done.wait [#allocation4], 256  }
  0x24   :  { %95 = vsyncadd [#allocation4], 4294967040 }
  0x25   :  { %42 = vsyncpa [#allocation3], 1 }
  0x26   :  { %43 = vsyncpa [#allocation4], 1 }

</bundles_post_ra>
